<compile_context>
chip_gen: v5e
topology: v5e:2x2
jax: 0.10.0
libtpu: 0.0.40
codegen_flags: <defaults>
</compile_context>

<pallas_src>
import functools

import numpy as np
import jax
import jax.numpy as jnp
from jax.experimental import pallas as pl
from jax.experimental.pallas import tpu as pltpu


LANE = 128              # lane width: pad the hidden feature dim to this
SUBLANE = 8             # sublane width: batch tile must be a multiple of this
MIN_ROWS_PER_SPLIT = 256  # only force a >=2-block grid (v7x megacore) above this


def _round_up(n, m):
    return ((n + m - 1) // m) * m


def _mlp_tanh_kernel(x_ref, w1_ref, b1_ref, w2_ref, b2_ref, w3_ref, b3_ref,
                     o_ref, *, compute_dtype):
    """Fused Linear->ReLU->Linear->ReLU->Linear->tanh on one (TB, .) tile.

    Matmuls run in `compute_dtype` (f32 or bf16) with f32 accumulation;
    bias add / ReLU / tanh stay in f32 (v5e has no bf16 VPU/EUP path).
    """
    x = x_ref[...].astype(compute_dtype)
    h1 = jnp.dot(x, w1_ref[...].astype(compute_dtype),
                 preferred_element_type=jnp.float32)
    h1 = jnp.maximum(h1 + b1_ref[...], 0.0)                      # ReLU
    h2 = jnp.dot(h1.astype(compute_dtype), w2_ref[...].astype(compute_dtype),
                 preferred_element_type=jnp.float32)
    h2 = jnp.maximum(h2 + b2_ref[...], 0.0)                      # ReLU
    a_avg = jnp.dot(h2.astype(compute_dtype), w3_ref[...].astype(compute_dtype),
                    preferred_element_type=jnp.float32)
    o_ref[...] = jnp.tanh(a_avg + b3_ref[...])                   # forward() tanh


def actor_ppo_forward(x, padded_params, *, block_b=1024):
    """forward(s) = tanh(MLP(s)) for the int-state_dim branch of ActorPPO.

    x: (B, state_dim) float32.
    padded_params: output of `pad_actor_ppo_params` -- hidden dim lane-padded
      to a multiple of 128, weights stored pre-transposed (in, out) in their
      compute dtype (bf16 by default), biases float32, output columns
      un-padded.
    block_b: max batch rows per grid step.  The kernel is HBM / grid-overhead
      bound at PPO sizes, so big tiles (1024-2048) are nearly free throughput;
      VMEM usage is estimated and vmem_limit_bytes raised accordingly.
    """
    w1, b1, w2, b2, w3, b3 = padded_params
    B, state_dim = x.shape
    mid_p = w1.shape[1]
    action_dim = w3.shape[1]
    compute_dtype = w1.dtype       # matmul operand dtype follows the weights

    # Batch tile: multiple of 8 sublanes, capped by block_b.  No wrapper-side
    # padding of x and no output slice: the grid is ceil(B / tb) and Pallas
    # masks the ragged last block (overhang reads are unspecified but each
    # output row depends only on its own input row, and overhang writes are
    # discarded).
    tb = _round_up(min(block_b, _round_up(B, SUBLANE)), SUBLANE)
    if B >= 2 * MIN_ROWS_PER_SPLIT and pl.cdiv(B, tb) < 2:
        # v7x megacore: ensure >= 2 parallel grid blocks so both TensorCores
        # get work once the batch is big enough to be worth splitting.
        tb = _round_up(pl.cdiv(B, 2), SUBLANE)
    n_blocks = pl.cdiv(B, tb)

    const_map = lambda i: (0, 0)   # weights/biases stay VMEM-resident
    kernel = functools.partial(_mlp_tanh_kernel, compute_dtype=compute_dtype)

    # Rough VMEM budget: double-buffered x/out tiles + (double-buffered)
    # resident weights + f32 intermediates (+ compute-dtype copies).  Set the
    # scoped-VMEM limit explicitly: v5e's default is only 16 MiB.  Cap at
    # 64 MiB (v7x physical VMEM per TensorCore).
    weight_bytes = sum(int(p.size) * p.dtype.itemsize
                       for p in (w1, b1, w2, b2, w3, b3))
    cd_size = jnp.dtype(compute_dtype).itemsize
    vmem_est = (2 * tb * state_dim * 4 + 2 * tb * action_dim * 4
                + 2 * weight_bytes
                + 2 * tb * mid_p * (4 + cd_size))
    vmem_limit = int(min(max(2 * vmem_est, 32 * 1024 * 1024),
                         64 * 1024 * 1024))

    flops = 2 * B * (state_dim * mid_p + mid_p * mid_p + mid_p * action_dim)
    bytes_accessed = 4 * B * (state_dim + action_dim) + weight_bytes

    # TODO(synk): on v7x with large mid_dim, consider single-buffering the six
    # constant operands (pipeline_mode=pl.Buffered(1)) to halve resident
    # weight VMEM; negligible at these weight sizes.
    return pl.pallas_call(
        kernel,
        out_shape=jax.ShapeDtypeStruct((B, action_dim), jnp.float32),
        grid=(n_blocks,),
        in_specs=[
            pl.BlockSpec((tb, state_dim), lambda i: (i, 0)),    # x tile streams
            pl.BlockSpec((state_dim, mid_p), const_map),        # w1
            pl.BlockSpec((1, mid_p), const_map),                # b1
            pl.BlockSpec((mid_p, mid_p), const_map),            # w2
            pl.BlockSpec((1, mid_p), const_map),                # b2
            pl.BlockSpec((mid_p, action_dim), const_map),       # w3
            pl.BlockSpec((1, action_dim), const_map),           # b3
        ],
        out_specs=pl.BlockSpec((tb, action_dim), lambda i: (i, 0)),
        compiler_params=pltpu.CompilerParams(
            dimension_semantics=("parallel",),                  # megacore split
            vmem_limit_bytes=vmem_limit),
        cost_estimate=pl.CostEstimate(
            flops=flops,
            transcendentals=B * action_dim,                     # tanh
            bytes_accessed=bytes_accessed),
    )(x, w1, b1, w2, b2, w3, b3)


def _orthogonal(key, shape, gain):
    """Deterministic orthogonal init (mimics torch.nn.init.orthogonal_)."""
    rows, cols = shape
    a = jax.random.normal(key, (max(rows, cols), min(rows, cols)), jnp.float32)
    q, r = jnp.linalg.qr(a)
    q = q * jnp.sign(jnp.diagonal(r))          # deterministic sign
    if rows < cols:
        q = q.T
    return gain * q[:rows, :cols]


def init_actor_ppo_params(key, state_dim, mid_dim, action_dim):
    """Un-padded params, weights stored (in, out).  Init approximates the
    PyTorch module (hidden-layer biases are zero rather than uniform; the last
    layer follows _layer_norm(std=0.1): orthogonal weight, bias 1e-6)."""
    k1, k2, k3 = jax.random.split(key, 3)

    def kaiming_uniform(k, fan_in, fan_out):
        bound = 1.0 / np.sqrt(fan_in)
        return jax.random.uniform(k, (fan_in, fan_out), jnp.float32,
                                  -bound, bound)

    w1 = kaiming_uniform(k1, state_dim, mid_dim)
    b1 = jnp.zeros((1, mid_dim), jnp.float32)
    w2 = kaiming_uniform(k2, mid_dim, mid_dim)
    b2 = jnp.zeros((1, mid_dim), jnp.float32)
    w3 = _orthogonal(k3, (action_dim, mid_dim), gain=0.1).T
    b3 = jnp.full((1, action_dim), 1e-6, jnp.float32)
    return (w1, b1, w2, b2, w3, b3)


def pad_actor_ppo_params(params, *, lane=LANE, weight_dtype=jnp.bfloat16):
    """Zero-pad the hidden feature dim to a multiple of 128 lanes and store
    the weight matrices in `weight_dtype` (bf16 by default: v6e/v7x MXUs are
    natively bf16 and it halves weight DMA / VMEM residency).  Biases stay
    float32.  The action_dim output columns are NOT padded -- the kernel
    writes a (B, action_dim) output directly (no 128-lane writeback inflation,
    no post-kernel slice)."""
    w1, b1, w2, b2, w3, b3 = params
    mid_dim = w1.shape[1]
    mid_p = _round_up(mid_dim, lane)
    dm = mid_p - mid_dim
    return (
        jnp.pad(w1, ((0, 0), (0, dm))).astype(weight_dtype),
        jnp.pad(b1, ((0, 0), (0, dm))),                       # f32 bias
        jnp.pad(w2, ((0, dm), (0, dm))).astype(weight_dtype),
        jnp.pad(b2, ((0, 0), (0, dm))),
        jnp.pad(w3, ((0, dm), (0, 0))).astype(weight_dtype),  # rows padded only
        b3,                                                   # (1, action_dim)
    )


def actor_ppo_forward_ref(x, params):
    """Pure-JAX reference (un-padded f32 params) for correctness checks."""
    w1, b1, w2, b2, w3, b3 = params
    h1 = jnp.maximum(x @ w1 + b1, 0.0)
    h2 = jnp.maximum(h1 @ w2 + b2, 0.0)
    return jnp.tanh(h2 @ w3 + b3)


if __name__ == "__main__":
    batch, state_dim, mid_dim, action_dim = 8, 16, 32, 4

    key = jax.random.PRNGKey(0)
    k_x, k_x2, k_p = jax.random.split(key, 3)
    x = jax.random.normal(k_x, (batch, state_dim), jnp.float32)

    params = init_actor_ppo_params(k_p, state_dim, mid_dim, action_dim)
    padded_f32 = pad_actor_ppo_params(params, weight_dtype=jnp.float32)
    padded_bf16 = pad_actor_ppo_params(params)                  # bf16 default

    ref = actor_ppo_forward_ref(x, params)

    # f32 weights, single tile (B=8 -> tb=8, one grid block).
    out = jax.block_until_ready(actor_ppo_forward(x, padded_f32))
    np.testing.assert_allclose(np.asarray(out), np.asarray(ref),
                               rtol=1e-5, atol=1e-5)
    assert out.shape == (batch, action_dim)

    # Ragged batch (B=300, not a multiple of 8) with the default big tile:
    # no wrapper-side pad/slice, Pallas masks the overhang rows.
    x2 = jax.random.normal(k_x2, (300, state_dim), jnp.float32)
    ref2 = actor_ppo_forward_ref(x2, params)
    out2 = jax.block_until_ready(actor_ppo_forward(x2, padded_f32))
    np.testing.assert_allclose(np.asarray(out2), np.asarray(ref2),
                               rtol=1e-5, atol=1e-5)
    assert out2.shape == (300, action_dim)

    # Multi-block pipelined grid (force a small tile) + ragged last block.
    out3 = jax.block_until_ready(
        actor_ppo_forward(x2, padded_f32, block_b=128))
    np.testing.assert_allclose(np.asarray(out3), np.asarray(ref2),
                               rtol=1e-5, atol=1e-5)

    # Default bf16-weight path (MXU-friendly on v6e/v7x), f32 accumulation.
    out_bf16 = jax.block_until_ready(actor_ppo_forward(x, padded_bf16))
    np.testing.assert_allclose(np.asarray(out_bf16), np.asarray(ref),
                               rtol=0, atol=5e-2)

    print("KERNEL_OK")
</pallas_src>

<mosaic_0001>
module attributes {stable_mosaic.version = 11 : i64} {
  func.func @_mlp_tanh_kernel(%arg0: i32, %arg1: memref<8x16xf32, #tpu.memory_space<vmem>>, %arg2: memref<16x128xf32, #tpu.memory_space<vmem>>, %arg3: memref<1x128xf32, #tpu.memory_space<vmem>>, %arg4: memref<128x128xf32, #tpu.memory_space<vmem>>, %arg5: memref<1x128xf32, #tpu.memory_space<vmem>>, %arg6: memref<128x4xf32, #tpu.memory_space<vmem>>, %arg7: memref<1x4xf32, #tpu.memory_space<vmem>>, %arg8: memref<8x4xf32, #tpu.memory_space<vmem>>) attributes {dimension_semantics = [#tpu.dimension_semantics<parallel>], iteration_bounds = array<i64: 1>, scalar_prefetch = 0 : i64, scratch_operands = 0 : i64, tpu.core_type = #tpu.core_type<tc>, window_params = [{transform_indices = @transform_0, window_bounds = array<i64: 8, 16>}, {pipeline_mode = #tpu.pipeline_mode<synchronous>, transform_indices = @transform_1, window_bounds = array<i64: 16, 128>}, {pipeline_mode = #tpu.pipeline_mode<synchronous>, transform_indices = @transform_2, window_bounds = array<i64: 1, 128>}, {pipeline_mode = #tpu.pipeline_mode<synchronous>, transform_indices = @transform_3, window_bounds = array<i64: 128, 128>}, {pipeline_mode = #tpu.pipeline_mode<synchronous>, transform_indices = @transform_4, window_bounds = array<i64: 1, 128>}, {pipeline_mode = #tpu.pipeline_mode<synchronous>, transform_indices = @transform_5, window_bounds = array<i64: 128, 4>}, {pipeline_mode = #tpu.pipeline_mode<synchronous>, transform_indices = @transform_6, window_bounds = array<i64: 1, 4>}, {transform_indices = @transform_7, window_bounds = array<i64: 8, 4>}]} {
    %c0 = arith.constant 0 : index
    %c0_0 = arith.constant 0 : index
    %0 = vector.load %arg1[%c0, %c0_0] : memref<8x16xf32, #tpu.memory_space<vmem>>, vector<8x16xf32>
    %c0_1 = arith.constant 0 : index
    %c0_2 = arith.constant 0 : index
    %1 = vector.load %arg2[%c0_1, %c0_2] : memref<16x128xf32, #tpu.memory_space<vmem>>, vector<16x128xf32>
    %cst = arith.constant dense<0.000000e+00> : vector<8x128xf32>
    %2 = tpu.matmul %0, %1, %cst {dimension_numbers = #tpu.dot_dimension_numbers<[1], [0], [0], [1], [0, 0, 1, 1], [], []>} : vector<8x16xf32>, vector<16x128xf32>, vector<8x128xf32> -> vector<8x128xf32>
    %c0_3 = arith.constant 0 : index
    %c0_4 = arith.constant 0 : index
    %3 = vector.load %arg3[%c0_3, %c0_4] : memref<1x128xf32, #tpu.memory_space<vmem>>, vector<1x128xf32>
    %4 = vector.broadcast %3 : vector<1x128xf32> to vector<8x128xf32>
    %5 = arith.addf %2, %4 : vector<8x128xf32>
    %cst_5 = arith.constant 0.000000e+00 : f32
    %6 = vector.broadcast %cst_5 : f32 to vector<8x128xf32>
    %7 = arith.maximumf %5, %6 : vector<8x128xf32>
    %c0_6 = arith.constant 0 : index
    %c0_7 = arith.constant 0 : index
    %8 = vector.load %arg4[%c0_6, %c0_7] : memref<128x128xf32, #tpu.memory_space<vmem>>, vector<128x128xf32>
    %cst_8 = arith.constant dense<0.000000e+00> : vector<8x128xf32>
    %9 = tpu.matmul %7, %8, %cst_8 {dimension_numbers = #tpu.dot_dimension_numbers<[1], [0], [0], [1], [0, 0, 1, 1], [], []>} : vector<8x128xf32>, vector<128x128xf32>, vector<8x128xf32> -> vector<8x128xf32>
    %c0_9 = arith.constant 0 : index
    %c0_10 = arith.constant 0 : index
    %10 = vector.load %arg5[%c0_9, %c0_10] : memref<1x128xf32, #tpu.memory_space<vmem>>, vector<1x128xf32>
    %11 = vector.broadcast %10 : vector<1x128xf32> to vector<8x128xf32>
    %12 = arith.addf %9, %11 : vector<8x128xf32>
    %cst_11 = arith.constant 0.000000e+00 : f32
    %13 = vector.broadcast %cst_11 : f32 to vector<8x128xf32>
    %14 = arith.maximumf %12, %13 : vector<8x128xf32>
    %c0_12 = arith.constant 0 : index
    %c0_13 = arith.constant 0 : index
    %15 = vector.load %arg6[%c0_12, %c0_13] : memref<128x4xf32, #tpu.memory_space<vmem>>, vector<128x4xf32>
    %cst_14 = arith.constant dense<0.000000e+00> : vector<8x4xf32>
    %16 = tpu.matmul %14, %15, %cst_14 {dimension_numbers = #tpu.dot_dimension_numbers<[1], [0], [0], [1], [0, 0, 1, 1], [], []>} : vector<8x128xf32>, vector<128x4xf32>, vector<8x4xf32> -> vector<8x4xf32>
    %c0_15 = arith.constant 0 : index
    %c0_16 = arith.constant 0 : index
    %17 = vector.load %arg7[%c0_15, %c0_16] : memref<1x4xf32, #tpu.memory_space<vmem>>, vector<1x4xf32>
    %18 = vector.broadcast %17 : vector<1x4xf32> to vector<8x4xf32>
    %19 = arith.addf %16, %18 : vector<8x4xf32>
    %20 = math.tanh %19 : vector<8x4xf32>
    %c0_17 = arith.constant 0 : index
    %c0_18 = arith.constant 0 : index
    %21 = vector.load %arg8[%c0_17, %c0_18] : memref<8x4xf32, #tpu.memory_space<vmem>>, vector<8x4xf32>
    tpu.vector_store %arg8[%c0_17, %c0_18], %20 {strides = array<i32>} : memref<8x4xf32, #tpu.memory_space<vmem>>, vector<8x4xf32>,
    return
  }
  func.func @transform_0(%arg0: i32) -> (i32, i32) {
    %c0_i32 = arith.constant 0 : i32
    %c0_i32_0 = arith.constant 0 : i32
    return %arg0, %c0_i32 : i32, i32
  }
  func.func @transform_1(%arg0: i32) -> (i32, i32) {
    %c0_i32 = arith.constant 0 : i32
    %c0_i32_0 = arith.constant 0 : i32
    %c0_i32_1 = arith.constant 0 : i32
    return %c0_i32, %c0_i32_0 : i32, i32
  }
  func.func @transform_2(%arg0: i32) -> (i32, i32) {
    %c0_i32 = arith.constant 0 : i32
    %c0_i32_0 = arith.constant 0 : i32
    %c0_i32_1 = arith.constant 0 : i32
    return %c0_i32, %c0_i32_0 : i32, i32
  }
  func.func @transform_3(%arg0: i32) -> (i32, i32) {
    %c0_i32 = arith.constant 0 : i32
    %c0_i32_0 = arith.constant 0 : i32
    %c0_i32_1 = arith.constant 0 : i32
    return %c0_i32, %c0_i32_0 : i32, i32
  }
  func.func @transform_4(%arg0: i32) -> (i32, i32) {
    %c0_i32 = arith.constant 0 : i32
    %c0_i32_0 = arith.constant 0 : i32
    %c0_i32_1 = arith.constant 0 : i32
    return %c0_i32, %c0_i32_0 : i32, i32
  }
  func.func @transform_5(%arg0: i32) -> (i32, i32) {
    %c0_i32 = arith.constant 0 : i32
    %c0_i32_0 = arith.constant 0 : i32
    %c0_i32_1 = arith.constant 0 : i32
    return %c0_i32, %c0_i32_0 : i32, i32
  }
  func.func @transform_6(%arg0: i32) -> (i32, i32) {
    %c0_i32 = arith.constant 0 : i32
    %c0_i32_0 = arith.constant 0 : i32
    %c0_i32_1 = arith.constant 0 : i32
    return %c0_i32, %c0_i32_0 : i32, i32
  }
  func.func @transform_7(%arg0: i32) -> (i32, i32) {
    %c0_i32 = arith.constant 0 : i32
    %c0_i32_0 = arith.constant 0 : i32
    return %arg0, %c0_i32 : i32, i32
  }
}

</mosaic_0001>

<bundles_post_ra>
// kernel: tpu_custom_call.1
= control target key start
LH: loop header
LB: loop body
LE: loop exit
PB: predicated region body
PF: predicated region fallthrough
CT: control target
= control target key end

     0   :  { %12 = vsyncpa [#allocation3], 0  ;;  %s398_s0 = inlined_call_operand.hbm [shape: f32[8,16], index: 0, kind: input, shape index: {}]   ;;  %s399_s1 = inlined_call_operand.hbm [shape: f32[16,128], index: 1, kind: input, shape index: {}]   ;;  %s400_s2 = inlined_call_operand.vmem [shape: f32[1,128], index: 2, kind: input, shape index: {}]   ;;  %s401_s3 = inlined_call_operand.vmem [shape: f32[128,128], index: 3, kind: input, shape index: {}]   ;;  %s402_s4 = inlined_call_operand.vmem [shape: f32[1,128], index: 4, kind: input, shape index: {}]   ;;  %s403_s5 = inlined_call_operand.vmem [shape: f32[128,4], index: 5, kind: input, shape index: {}]   ;;  %s404_s6 = inlined_call_operand.vmem [shape: f32[1,4], index: 6, kind: input, shape index: {}]   ;;  %s405_s7 = inlined_call_operand.vmem [shape: f32[8,4], index: 7, kind: output, shape index: {}]  }
   0x1   :  { %s19_s26 = sshll.u32 %s398_s0, 4  ;;  %s20_s26 = int_to_ptr.hbm [resolvable:$true] %s19_s26 }
   0x2   :  { %13 = vsyncpa [#allocation5], 0  ;;  %s240_s27 = smov [#allocation2]   ;;  %s29_s8 = sshll.u32 %s399_s1, 4  ;;  %s30_s8 = int_to_ptr.hbm [resolvable:$true] %s29_s8 }
   0x3   :  { %s21_s28 = sshll.u32 %s240_s27, 4  ;;  %s241_s9 = smov [#allocation4]   ;;  %s22_s28 = int_to_ptr.vmem [resolvable:$true] %s21_s28 }
   0x4   :  { %24 = dma.hbm_to_vmem [thread:$0]  %s20_s26, 128, %s22_s28, [#allocation3]  }
   0x5   :  { %s31_s10 = sshll.u32 %s241_s9, 4  ;;  %s242_s11 = smov 128   ;;  %s32_s10 = int_to_ptr.vmem [resolvable:$true] %s31_s10 }
   0x6   :  { %s243_s12 = smov 8  }
   0x7   :  { %37 = dma.hbm_to_vmem [thread:$0]  %s30_s8, 256, %s32_s10, [#allocation5], %s242_s11, %s242_s11, %s243_s12  }
   0x8   :  { %236 = dma.done.wait [#allocation3], 128  }
   0x9   :  { %237 = vsyncadd [#allocation3], 4294967168 }
   0xa   :  { %238 = dma.done.wait [#allocation5], 256  }
   0xb   :  { %239 = vsyncadd [#allocation5], 4294967040  ;;  %v58_v0 = vld [vmem:[#allocation4 + $0x8] sm:$0xff]  ;;  %v57_v1 = vld [vmem:[#allocation4] sm:$0xff]  ;;  %vm63_vm0 = vcmask 130048   ;;  %vm170_vm1 = vcmask 31744  }
   0xc   :  { %81 = vmatpush.msra.mxu0 %v58_v0  ;;  %v56_v2 = vld [vmem:[#allocation2] sm:$0xff]  ;;  %v103_v3 = vld [vmem:[%s401_s3 + $0x78] sm:$0xff]  ;;  %v102_v4 = vld [vmem:[%s401_s3 + $0x70] sm:$0xff] }
   0xd   :  { %108 = vmatpush.msra.mxu1 %v103_v3  ;;  %v101_v5 = vld [vmem:[%s401_s3 + $0x68] sm:$0xff]  ;;  %v100_v6 = vld [vmem:[%s401_s3 + $0x60] sm:$0xff]  ;;  %v99_v7 = vld [vmem:[%s401_s3 + $0x58] sm:$0xff] }
   0xe   :  { %82 = vmatpush.msra.mxu0 %v57_v1  ;;  %v98_v8 = vld [vmem:[%s401_s3 + $0x50] sm:$0xff]  ;;  %v97_v9 = vld [vmem:[%s401_s3 + $0x48] sm:$0xff]  ;;  %v96_v10 = vld [vmem:[%s401_s3 + $0x40] sm:$0xff] }
   0xf   :  { %178 = vmatmul.msk.f32.vlgmr.msra.gmra.mxu0 %vm63_vm0, %v56_v2  ;;  %109 = vmatpush.msra.mxu1 %v102_v4  ;;  %v95_v11 = vld [vmem:[%s401_s3 + $0x38] sm:$0xff]  ;;  %v94_v12 = vld [vmem:[%s401_s3 + $0x30] sm:$0xff]  ;;  %v93_v13 = vld [vmem:[%s401_s3 + $0x28] sm:$0xff] }
  0x10   :  { %v92_v14 = vld [vmem:[%s401_s3 + $0x20] sm:$0xff]  ;;  %v91_v15 = vld [vmem:[%s401_s3 + $0x18] sm:$0xff]  ;;  %v90_v16 = vld [vmem:[%s401_s3 + $0x10] sm:$0xff] }
  0x11   :  { %110 = vmatpush.msra.mxu1 %v101_v5  ;;  %v89_v17 = vld [vmem:[%s401_s3 + $0x8] sm:$0xff]  ;;  %v88_v18 = vld [vmem:[%s401_s3] sm:$0xff]  ;;  %v144_v19 = vld [vmem:[%s403_s5 + $0x78] sm:$0xff] }
  0x12   :  { %v143_v20 = vld [vmem:[%s403_s5 + $0x70] sm:$0xff]  ;;  %149 = vmatpush.msra.mxu2 %v144_v19  ;;  %v142_v21 = vld [vmem:[%s403_s5 + $0x68] sm:$0xff]  ;;  %v141_v22 = vld [vmem:[%s403_s5 + $0x60] sm:$0xff] }
  0x13   :  { %111 = vmatpush.msra.mxu1 %v100_v6  ;;  %v140_v23 = vld [vmem:[%s403_s5 + $0x58] sm:$0xff]  ;;  %v139_v24 = vld [vmem:[%s403_s5 + $0x50] sm:$0xff]  ;;  %v138_v25 = vld [vmem:[%s403_s5 + $0x48] sm:$0xff] }
  0x14   :  { %150 = vmatpush.msra.mxu2 %v143_v20  ;;  %v137_v26 = vld [vmem:[%s403_s5 + $0x40] sm:$0xff]  ;;  %v136_v27 = vld [vmem:[%s403_s5 + $0x38] sm:$0xff]  ;;  %v135_v28 = vld [vmem:[%s403_s5 + $0x30] sm:$0xff] }
  0x15   :  { %112 = vmatpush.msra.mxu1 %v99_v7  ;;  %v134_v29 = vld [vmem:[%s403_s5 + $0x28] sm:$0xff]  ;;  %v133_v30 = vld [vmem:[%s403_s5 + $0x20] sm:$0xff]  ;;  %v132_v31 = vld [vmem:[%s403_s5 + $0x18] sm:$0xff] }
  0x16   :  { %151 = vmatpush.msra.mxu2 %v142_v21  ;;  %v183_v32 = vld [vmem:[%s400_s2] ss:$0 sm:$0xff]  ;;  %v131_v36 = vld [vmem:[%s403_s5 + $0x10] sm:$0xff]  ;;  %v130_v37 = vld [vmem:[%s403_s5 + $0x8] sm:$0xff] }
  0x17   :  { %113 = vmatpush.msra.mxu1 %v98_v8  ;;  %v129_v38 = vld [vmem:[%s403_s5] sm:$0xff] }
  0x18   :  { %152 = vmatpush.msra.mxu2 %v141_v22  ;;  %v184_v39 = vld [vmem:[%s402_s4] ss:$0 sm:$0xff] }
  0x19   :  { %114 = vmatpush.msra.mxu1 %v97_v9  ;;  %v185_v43 = vld [vmem:[%s404_s6] ss:$0 sm:$0xff] }
  0x1a   :  { %153 = vmatpush.msra.mxu2 %v140_v23 }
  0x1b   :  { %115 = vmatpush.msra.mxu1 %v96_v10 }
  0x1c   :  { %154 = vmatpush.msra.mxu2 %v139_v24 }
  0x1d   :  { %116 = vmatpush.msra.mxu1 %v95_v11 }
  0x1e   :  { %155 = vmatpush.msra.mxu2 %v138_v25 }
  0x1f   :  { %117 = vmatpush.msra.mxu1 %v94_v12 }
  0x20   :  { %156 = vmatpush.msra.mxu2 %v137_v26 }
  0x21   :  { %118 = vmatpush.msra.mxu1 %v93_v13 }
  0x22   :  { %157 = vmatpush.msra.mxu2 %v136_v27 }
  0x23   :  { %119 = vmatpush.msra.mxu1 %v92_v14 }
  0x24   :  { %158 = vmatpush.msra.mxu2 %v135_v28 }
  0x25   :  { %120 = vmatpush.msra.mxu1 %v91_v15 }
  0x26   :  { %159 = vmatpush.msra.mxu2 %v134_v29 }
  0x27   :  { %121 = vmatpush.msra.mxu1 %v90_v16 }
  0x28   :  { %160 = vmatpush.msra.mxu2 %v133_v30 }
  0x29   :  { %122 = vmatpush.msra.mxu1 %v89_v17 }
  0x2a   :  { %161 = vmatpush.msra.mxu2 %v132_v31 }
  0x2b   :  { %123 = vmatpush.msra.mxu1 %v88_v18 }
  0x2c   :  { %162 = vmatpush.msra.mxu2 %v131_v36 }
  0x2e   :  { %163 = vmatpush.msra.mxu2 %v130_v37 }
  0x30   :  { %164 = vmatpush.msra.mxu2 %v129_v38 }
  0x8c   :  { %v84_v33 = vpop.f32.mrf.mxu0 }
  0x8d   :  { %v85_v34 = vadd.f32 %v183_v32, %v84_v33 }
  0x8f   :  { %v87_v35 = vmax.f32 %v85_v34, 0.0 }
  0x91   :  { %124 = vmatmul.f32.vlgmr.msra.gmra.mxu1 %v87_v35 }
 0x10e   :  { %v125_v40 = vpop.f32.mrf.mxu1 }
 0x10f   :  { %v126_v41 = vadd.f32 %v184_v39, %v125_v40 }
 0x111   :  { %v128_v42 = vmax.f32 %v126_v41, 0.0 }
 0x113   :  { %165 = vmatmul.f32.vlgmr.msra.gmra.mxu2 %v128_v42 }
 0x196   :  { %v166_v44 = vpop.f32.mrf.mxu2 }
 0x197   :  { %v167_v45 = vadd.f32 %v185_v43, %v166_v44 }
 0x199   :  { %186 = vtanh.f32 %v167_v45 }
 0x19f   :  { %v187_v46 = vpop.eup %186 }
 0x1a0   :  { %171 = vst.msk [vmem:[%s405_s7] sm:$0xff] %vm170_vm1, %v187_v46 }
 0x1a1   :  { %176 = vsyncpa [#allocation3], 1 }
 0x1a2   :  { %177 = vsyncpa [#allocation5], 1 }

</bundles_post_ra>
